<compile_context>
chip_gen: v6e
topology: v6e:2x2x1
jax: 0.10.0
libtpu: 0.0.40
codegen_flags: <defaults>
</compile_context>

<pallas_src>
import jax
import jax.numpy as jnp
from jax.experimental import pallas as pl
from jax.experimental.pallas import tpu as pltpu

MAX_LENGTH = 60  # same default as the PyTorch module


def attn_decoder_kernel(
    tok_ref,      # SMEM (1,) int32            -- scalar prefetch (token id)
    emb_ref,      # VMEM [V, H]                -- full embedding table (resident)
    hidden_ref,   # VMEM [1, H]
    enc_ref,      # VMEM [L, H]                -- encoder outputs
    w_attn_ref,   # VMEM [2H, L]   attn.weight.T   (rows 0:H embedded, H:2H hidden)
    w_comb_ref,   # VMEM [2H, H]   attn_combine.weight.T
    w_gru_ref,    # VMEM [2H, 3H]  rows 0:H = W_ih.T, rows H:2H = W_hh.T (gates r|z|n)
    w_out_ref,    # VMEM [H, V]    out.weight.T
    bias_ref,     # VMEM [8, >=128] packed biases (see prepare_params)
    out_ref,      # VMEM [1, V]    log-probs
    hid_out_ref,  # VMEM [1, H]    new hidden state
    attn_w_ref,   # VMEM [1, L]    attention weights
):
    V, H = emb_ref.shape
    L = enc_ref.shape[0]

    # ---- embedding lookup: one-hot row select on the MXU (exact; table is resident) ----
    tok = tok_ref[0]
    onehot = (jax.lax.broadcasted_iota(jnp.int32, (1, V), 1) == tok).astype(jnp.float32)
    embedded = jnp.dot(onehot, emb_ref[...], preferred_element_type=jnp.float32)   # [1, H]
    hidden = hidden_ref[...]                                                       # [1, H]
    # nn.Dropout(p=0.1) is identity in eval mode.

    biases = bias_ref[...]                      # one vreg-sized load
    b_attn = biases[0:1, 0:L]
    b_comb = biases[1:2, 0:H]
    b_ih = biases[2:3, 0:3 * H]
    b_hh = biases[3:4, 0:3 * H]
    b_out = biases[4:5, 0:V]

    # ---- attention weights: softmax(attn(cat(embedded, hidden))) ----
    attn_logits = (
        jnp.dot(embedded, w_attn_ref[0:H, :], preferred_element_type=jnp.float32)
        + jnp.dot(hidden, w_attn_ref[H:2 * H, :], preferred_element_type=jnp.float32)
        + b_attn
    )                                                                              # [1, L]
    attn_logits = attn_logits - jnp.max(attn_logits, axis=1, keepdims=True)
    e = jnp.exp(attn_logits)
    attn_w = e / jnp.sum(e, axis=1, keepdims=True)
    attn_w_ref[...] = attn_w

    # ---- attn_applied = attn_weights @ encoder_outputs ----
    attn_applied = jnp.dot(attn_w, enc_ref[...], preferred_element_type=jnp.float32)  # [1, H]

    # ---- attn_combine + leaky_relu (F.leaky_relu default slope 0.01) ----
    comb = (
        jnp.dot(embedded, w_comb_ref[0:H, :], preferred_element_type=jnp.float32)
        + jnp.dot(attn_applied, w_comb_ref[H:2 * H, :], preferred_element_type=jnp.float32)
        + b_comb
    )                                                                              # [1, H]
    x = jnp.where(comb > 0, comb, 0.01 * comb)

    # ---- single GRU step: two packed matmuls, gates split by static lane slices ----
    gi = jnp.dot(x, w_gru_ref[0:H, :], preferred_element_type=jnp.float32) + b_ih        # [1, 3H]
    gh = jnp.dot(hidden, w_gru_ref[H:2 * H, :], preferred_element_type=jnp.float32) + b_hh
    r = jax.nn.sigmoid(gi[:, 0:H] + gh[:, 0:H])
    z = jax.nn.sigmoid(gi[:, H:2 * H] + gh[:, H:2 * H])
    n = jnp.tanh(gi[:, 2 * H:3 * H] + r * gh[:, 2 * H:3 * H])
    h_new = (1.0 - z) * n + z * hidden
    hid_out_ref[...] = h_new

    # ---- output projection + log_softmax ----
    logits = jnp.dot(h_new, w_out_ref[...], preferred_element_type=jnp.float32) + b_out  # [1, V]
    m = jnp.max(logits, axis=1, keepdims=True)
    lse = jnp.log(jnp.sum(jnp.exp(logits - m), axis=1, keepdims=True)) + m
    out_ref[...] = logits - lse


def prepare_params(params):
    """One-time re-layout of PyTorch-convention weights into kernel-friendly 2-D slabs.

    Call ONCE at init; the per-step forward does no weight reshaping/transposing.
    """
    f32 = jnp.float32
    V, H = params["embedding"].shape
    L = params["attn_w"].shape[0]

    lane = ((max(L, H, 3 * H, V) + 127) // 128) * 128
    bias = jnp.zeros((8, lane), f32)
    bias = bias.at[0, :L].set(params["attn_b"].astype(f32))
    bias = bias.at[1, :H].set(params["comb_b"].astype(f32))
    bias = bias.at[2, :3 * H].set(params["gru_b_ih"].astype(f32))
    bias = bias.at[3, :3 * H].set(params["gru_b_hh"].astype(f32))
    bias = bias.at[4, :V].set(params["out_b"].astype(f32))

    return {
        "emb": params["embedding"].astype(f32),                                  # [V, H]
        "w_attn": params["attn_w"].T.astype(f32),                                # [2H, L]
        "w_comb": params["comb_w"].T.astype(f32),                                # [2H, H]
        "w_gru": jnp.concatenate(
            [params["gru_w_ih"].T, params["gru_w_hh"].T], axis=0).astype(f32),   # [2H, 3H]
        "w_out": params["out_w"].T.astype(f32),                                  # [H, V]
        "bias": bias,                                                            # [8, lane]
    }


@jax.jit
def attn_decoder_forward(tok, hidden, encoder_outputs, prepped):
    """tok: (1,) int32; hidden: [1,1,H]; encoder_outputs: [L,H] f32; prepped: prepare_params()."""
    V, H = prepped["emb"].shape
    L = encoder_outputs.shape[0]
    lane = prepped["bias"].shape[1]
    hidden2d = hidden.reshape(1, H)

    spec = lambda shape: pl.BlockSpec(shape, lambda i, tok: (0, 0))

    grid_spec = pltpu.PrefetchScalarGridSpec(
        num_scalar_prefetch=1,
        grid=(1,),
        in_specs=[
            spec((V, H)),             # embedding table
            spec((1, H)),             # hidden
            spec((L, H)),             # encoder_outputs
            spec((2 * H, L)),         # w_attn
            spec((2 * H, H)),         # w_comb
            spec((2 * H, 3 * H)),     # w_gru (ih | hh stacked on rows)
            spec((H, V)),             # w_out
            spec((8, lane)),          # packed biases
        ],
        out_specs=[
            spec((1, V)),
            spec((1, H)),
            spec((1, L)),
        ],
    )

    out, h_new, attn_w = pl.pallas_call(
        attn_decoder_kernel,
        grid_spec=grid_spec,
        out_shape=(
            jax.ShapeDtypeStruct((1, V), jnp.float32),
            jax.ShapeDtypeStruct((1, H), jnp.float32),
            jax.ShapeDtypeStruct((1, L), jnp.float32),
        ),
        compiler_params=pltpu.CompilerParams(dimension_semantics=("arbitrary",)),
    )(tok, prepped["emb"], hidden2d, encoder_outputs, prepped["w_attn"],
      prepped["w_comb"], prepped["w_gru"], prepped["w_out"], prepped["bias"])

    return out, h_new.reshape(1, 1, H), attn_w


def reference_forward(tok, hidden, encoder_outputs, params):
    """Pure-JAX reference of the PyTorch forward (eval mode)."""
    H = params["embedding"].shape[1]
    embedded = params["embedding"][tok[0]].reshape(1, H)
    h = hidden.reshape(1, H)
    attn_logits = jnp.concatenate([embedded, h], axis=1) @ params["attn_w"].T + params["attn_b"]
    attn_w = jax.nn.softmax(attn_logits, axis=1)
    attn_applied = attn_w @ encoder_outputs
    comb = jnp.concatenate([embedded, attn_applied], axis=1) @ params["comb_w"].T + params["comb_b"]
    x = jnp.where(comb > 0, comb, 0.01 * comb)
    gi = x @ params["gru_w_ih"].T + params["gru_b_ih"]
    gh = h @ params["gru_w_hh"].T + params["gru_b_hh"]
    r = jax.nn.sigmoid(gi[:, :H] + gh[:, :H])
    z = jax.nn.sigmoid(gi[:, H:2 * H] + gh[:, H:2 * H])
    n = jnp.tanh(gi[:, 2 * H:] + r * gh[:, 2 * H:])
    h_new = (1.0 - z) * n + z * h
    logits = h_new @ params["out_w"].T + params["out_b"]
    return jax.nn.log_softmax(logits, axis=1), h_new.reshape(1, 1, H), attn_w


if __name__ == "__main__":
    H = 32            # hidden_size
    V = 64            # output_size (vocab)
    L = MAX_LENGTH    # max_length = 60

    key = jax.random.PRNGKey(0)
    ks = jax.random.split(key, 12)
    init = lambda k, shape: (0.1 * jax.random.normal(k, shape)).astype(jnp.float32)

    params = {
        "embedding": init(ks[0], (V, H)),
        "attn_w":    init(ks[1], (L, 2 * H)),
        "attn_b":    init(ks[2], (L,)),
        "comb_w":    init(ks[3], (H, 2 * H)),
        "comb_b":    init(ks[4], (H,)),
        "gru_w_ih":  init(ks[5], (3 * H, H)),
        "gru_b_ih":  init(ks[6], (3 * H,)),
        "gru_w_hh":  init(ks[7], (3 * H, H)),
        "gru_b_hh":  init(ks[8], (3 * H,)),
        "out_w":     init(ks[9], (V, H)),
        "out_b":     init(ks[10], (V,)),
    }

    # One-time weight re-layout (NOT on the per-step path).
    prepped = prepare_params(params)

    tok = jnp.array([5], dtype=jnp.int32)
    hidden = jnp.zeros((1, 1, H), dtype=jnp.float32)          # initHidden()
    encoder_outputs = init(ks[11], (L, H))

    # TODO(synk): nn.Dropout(p=0.1) is stochastic in train mode; implemented as identity (eval).
    out, h_new, attn_w = attn_decoder_forward(tok, hidden, encoder_outputs, prepped)
    jax.block_until_ready((out, h_new, attn_w))

    ref_out, ref_h, ref_aw = reference_forward(tok, hidden, encoder_outputs, params)
    # Tight enough to catch any weight-layout/transpose bug; loose enough for MXU
    # f32-matmul pass differences vs. the XLA reference.
    assert jnp.allclose(out, ref_out, rtol=2e-3, atol=2e-3)
    assert jnp.allclose(h_new, ref_h, rtol=2e-3, atol=2e-3)
    assert jnp.allclose(attn_w, ref_aw, rtol=2e-3, atol=2e-3)

    print("KERNEL_OK")
</pallas_src>

<mosaic_0001>
module attributes {stable_mosaic.version = 11 : i64} {
  func.func @attn_decoder_kernel(%arg0: i32, %arg1: memref<1xi32, #tpu.memory_space<smem>>, %arg2: memref<64x32xf32, #tpu.memory_space<vmem>>, %arg3: memref<1x32xf32, #tpu.memory_space<vmem>>, %arg4: memref<60x32xf32, #tpu.memory_space<vmem>>, %arg5: memref<64x60xf32, #tpu.memory_space<vmem>>, %arg6: memref<64x32xf32, #tpu.memory_space<vmem>>, %arg7: memref<64x96xf32, #tpu.memory_space<vmem>>, %arg8: memref<32x64xf32, #tpu.memory_space<vmem>>, %arg9: memref<8x128xf32, #tpu.memory_space<vmem>>, %arg10: memref<1x64xf32, #tpu.memory_space<vmem>>, %arg11: memref<1x32xf32, #tpu.memory_space<vmem>>, %arg12: memref<1x60xf32, #tpu.memory_space<vmem>>) attributes {dimension_semantics = [#tpu.dimension_semantics<arbitrary>], iteration_bounds = array<i64: 1>, scalar_prefetch = 1 : i64, scratch_operands = 0 : i64, tpu.core_type = #tpu.core_type<tc>, window_params = [{pipeline_mode = #tpu.pipeline_mode<synchronous>, transform_indices = @transform_0, window_bounds = array<i64: 64, 32>}, {pipeline_mode = #tpu.pipeline_mode<synchronous>, transform_indices = @transform_1, window_bounds = array<i64: 1, 32>}, {pipeline_mode = #tpu.pipeline_mode<synchronous>, transform_indices = @transform_2, window_bounds = array<i64: 60, 32>}, {pipeline_mode = #tpu.pipeline_mode<synchronous>, transform_indices = @transform_3, window_bounds = array<i64: 64, 60>}, {pipeline_mode = #tpu.pipeline_mode<synchronous>, transform_indices = @transform_4, window_bounds = array<i64: 64, 32>}, {pipeline_mode = #tpu.pipeline_mode<synchronous>, transform_indices = @transform_5, window_bounds = array<i64: 64, 96>}, {pipeline_mode = #tpu.pipeline_mode<synchronous>, transform_indices = @transform_6, window_bounds = array<i64: 32, 64>}, {pipeline_mode = #tpu.pipeline_mode<synchronous>, transform_indices = @transform_7, window_bounds = array<i64: 8, 128>}, {pipeline_mode = #tpu.pipeline_mode<synchronous>, transform_indices = @transform_8, window_bounds = array<i64: 1, 64>}, {pipeline_mode = #tpu.pipeline_mode<synchronous>, transform_indices = @transform_9, window_bounds = array<i64: 1, 32>}, {pipeline_mode = #tpu.pipeline_mode<synchronous>, transform_indices = @transform_10, window_bounds = array<i64: 1, 60>}]} {
    %c0 = arith.constant 0 : index
    %0 = memref.load %arg1[%c0] : memref<1xi32, #tpu.memory_space<smem>>
    %1 = tpu.iota {dimensions = array<i32: 1>} : vector<1x64xi32>
    %2 = vector.broadcast %0 : i32 to vector<1x64xi32>
    %3 = arith.cmpi eq, %1, %2 : vector<1x64xi32>
    %4 = arith.extui %3 : vector<1x64xi1> to vector<1x64xi32>
    %5 = arith.sitofp %4 : vector<1x64xi32> to vector<1x64xf32>
    %c0_0 = arith.constant 0 : index
    %c0_1 = arith.constant 0 : index
    %6 = vector.load %arg2[%c0_0, %c0_1] : memref<64x32xf32, #tpu.memory_space<vmem>>, vector<64x32xf32>
    %cst = arith.constant dense<0.000000e+00> : vector<1x32xf32>
    %7 = tpu.matmul %5, %6, %cst {dimension_numbers = #tpu.dot_dimension_numbers<[1], [0], [0], [1], [0, 0, 1, 1], [], []>} : vector<1x64xf32>, vector<64x32xf32>, vector<1x32xf32> -> vector<1x32xf32>
    %c0_2 = arith.constant 0 : index
    %c0_3 = arith.constant 0 : index
    %8 = vector.load %arg3[%c0_2, %c0_3] : memref<1x32xf32, #tpu.memory_space<vmem>>, vector<1x32xf32>
    %c0_4 = arith.constant 0 : index
    %c0_5 = arith.constant 0 : index
    %9 = vector.load %arg9[%c0_4, %c0_5] : memref<8x128xf32, #tpu.memory_space<vmem>>, vector<8x128xf32>
    %10 = vector.extract_strided_slice %9 {offsets = [0, 0], sizes = [1, 60], strides = [1, 1]} : vector<8x128xf32> to vector<1x60xf32>
    %11 = vector.extract_strided_slice %9 {offsets = [1, 0], sizes = [1, 32], strides = [1, 1]} : vector<8x128xf32> to vector<1x32xf32>
    %12 = vector.extract_strided_slice %9 {offsets = [2, 0], sizes = [1, 96], strides = [1, 1]} : vector<8x128xf32> to vector<1x96xf32>
    %13 = vector.extract_strided_slice %9 {offsets = [3, 0], sizes = [1, 96], strides = [1, 1]} : vector<8x128xf32> to vector<1x96xf32>
    %14 = vector.extract_strided_slice %9 {offsets = [4, 0], sizes = [1, 64], strides = [1, 1]} : vector<8x128xf32> to vector<1x64xf32>
    %c0_6 = arith.constant 0 : index
    %c0_7 = arith.constant 0 : index
    %15 = vector.load %arg5[%c0_6, %c0_7] : memref<64x60xf32, #tpu.memory_space<vmem>>, vector<32x60xf32>
    %cst_8 = arith.constant dense<0.000000e+00> : vector<1x60xf32>
    %16 = tpu.matmul %7, %15, %cst_8 {dimension_numbers = #tpu.dot_dimension_numbers<[1], [0], [0], [1], [0, 0, 1, 1], [], []>} : vector<1x32xf32>, vector<32x60xf32>, vector<1x60xf32> -> vector<1x60xf32>
    %c32 = arith.constant 32 : index
    %c0_9 = arith.constant 0 : index
    %17 = vector.load %arg5[%c32, %c0_9] : memref<64x60xf32, #tpu.memory_space<vmem>>, vector<32x60xf32>
    %cst_10 = arith.constant dense<0.000000e+00> : vector<1x60xf32>
    %18 = tpu.matmul %8, %17, %cst_10 {dimension_numbers = #tpu.dot_dimension_numbers<[1], [0], [0], [1], [0, 0, 1, 1], [], []>} : vector<1x32xf32>, vector<32x60xf32>, vector<1x60xf32> -> vector<1x60xf32>
    %19 = arith.addf %16, %18 : vector<1x60xf32>
    %20 = arith.addf %19, %10 : vector<1x60xf32>
    %cst_11 = arith.constant dense<0xFF800000> : vector<1xf32>
    %21 = vector.multi_reduction <maximumf>, %20, %cst_11 [1] : vector<1x60xf32> to vector<1xf32>
    %22 = vector.shape_cast %21 : vector<1xf32> to vector<1x1xf32>
    %23 = vector.broadcast %22 : vector<1x1xf32> to vector<1x60xf32>
    %24 = arith.subf %20, %23 : vector<1x60xf32>
    %25 = math.exp %24 : vector<1x60xf32>
    %cst_12 = arith.constant dense<0.000000e+00> : vector<1xf32>
    %26 = vector.multi_reduction <add>, %25, %cst_12 [1] : vector<1x60xf32> to vector<1xf32>
    %27 = vector.shape_cast %26 : vector<1xf32> to vector<1x1xf32>
    %28 = vector.broadcast %27 : vector<1x1xf32> to vector<1x60xf32>
    %29 = arith.divf %25, %28 : vector<1x60xf32>
    %c0_13 = arith.constant 0 : index
    %c0_14 = arith.constant 0 : index
    %30 = vector.load %arg12[%c0_13, %c0_14] : memref<1x60xf32, #tpu.memory_space<vmem>>, vector<1x60xf32>
    tpu.vector_store %arg12[%c0_13, %c0_14], %29 {strides = array<i32>} : memref<1x60xf32, #tpu.memory_space<vmem>>, vector<1x60xf32>,
    %c0_15 = arith.constant 0 : index
    %c0_16 = arith.constant 0 : index
    %31 = vector.load %arg4[%c0_15, %c0_16] : memref<60x32xf32, #tpu.memory_space<vmem>>, vector<60x32xf32>
    %cst_17 = arith.constant dense<0.000000e+00> : vector<1x32xf32>
    %32 = tpu.matmul %29, %31, %cst_17 {dimension_numbers = #tpu.dot_dimension_numbers<[1], [0], [0], [1], [0, 0, 1, 1], [], []>} : vector<1x60xf32>, vector<60x32xf32>, vector<1x32xf32> -> vector<1x32xf32>
    %c0_18 = arith.constant 0 : index
    %c0_19 = arith.constant 0 : index
    %33 = vector.load %arg6[%c0_18, %c0_19] : memref<64x32xf32, #tpu.memory_space<vmem>>, vector<32x32xf32>
    %cst_20 = arith.constant dense<0.000000e+00> : vector<1x32xf32>
    %34 = tpu.matmul %7, %33, %cst_20 {dimension_numbers = #tpu.dot_dimension_numbers<[1], [0], [0], [1], [0, 0, 1, 1], [], []>} : vector<1x32xf32>, vector<32x32xf32>, vector<1x32xf32> -> vector<1x32xf32>
    %c32_21 = arith.constant 32 : index
    %c0_22 = arith.constant 0 : index
    %35 = vector.load %arg6[%c32_21, %c0_22] : memref<64x32xf32, #tpu.memory_space<vmem>>, vector<32x32xf32>
    %cst_23 = arith.constant dense<0.000000e+00> : vector<1x32xf32>
    %36 = tpu.matmul %32, %35, %cst_23 {dimension_numbers = #tpu.dot_dimension_numbers<[1], [0], [0], [1], [0, 0, 1, 1], [], []>} : vector<1x32xf32>, vector<32x32xf32>, vector<1x32xf32> -> vector<1x32xf32>
    %37 = arith.addf %34, %36 : vector<1x32xf32>
    %38 = arith.addf %37, %11 : vector<1x32xf32>
    %cst_24 = arith.constant 0.000000e+00 : f32
    %39 = vector.broadcast %cst_24 : f32 to vector<1x32xf32>
    %40 = arith.cmpf ogt, %38, %39 : vector<1x32xf32>
    %cst_25 = arith.constant 0.00999999977 : f32
    %41 = vector.broadcast %cst_25 : f32 to vector<1x32xf32>
    %42 = arith.mulf %41, %38 : vector<1x32xf32>
    %43 = arith.select %40, %38, %42 : vector<1x32xi1>, vector<1x32xf32>
    %c0_26 = arith.constant 0 : index
    %c0_27 = arith.constant 0 : index
    %44 = vector.load %arg7[%c0_26, %c0_27] : memref<64x96xf32, #tpu.memory_space<vmem>>, vector<32x96xf32>
    %cst_28 = arith.constant dense<0.000000e+00> : vector<1x96xf32>
    %45 = tpu.matmul %43, %44, %cst_28 {dimension_numbers = #tpu.dot_dimension_numbers<[1], [0], [0], [1], [0, 0, 1, 1], [], []>} : vector<1x32xf32>, vector<32x96xf32>, vector<1x96xf32> -> vector<1x96xf32>
    %46 = arith.addf %45, %12 : vector<1x96xf32>
    %c32_29 = arith.constant 32 : index
    %c0_30 = arith.constant 0 : index
    %47 = vector.load %arg7[%c32_29, %c0_30] : memref<64x96xf32, #tpu.memory_space<vmem>>, vector<32x96xf32>
    %cst_31 = arith.constant dense<0.000000e+00> : vector<1x96xf32>
    %48 = tpu.matmul %8, %47, %cst_31 {dimension_numbers = #tpu.dot_dimension_numbers<[1], [0], [0], [1], [0, 0, 1, 1], [], []>} : vector<1x32xf32>, vector<32x96xf32>, vector<1x96xf32> -> vector<1x96xf32>
    %49 = arith.addf %48, %13 : vector<1x96xf32>
    %50 = vector.extract_strided_slice %46 {offsets = [0, 0], sizes = [1, 32], strides = [1, 1]} : vector<1x96xf32> to vector<1x32xf32>
    %51 = vector.extract_strided_slice %49 {offsets = [0, 0], sizes = [1, 32], strides = [1, 1]} : vector<1x96xf32> to vector<1x32xf32>
    %52 = arith.addf %50, %51 : vector<1x32xf32>
    %53 = arith.negf %52 : vector<1x32xf32>
    %54 = math.exp %53 : vector<1x32xf32>
    %cst_32 = arith.constant 1.000000e+00 : f32
    %55 = vector.broadcast %cst_32 : f32 to vector<1x32xf32>
    %56 = arith.addf %55, %54 : vector<1x32xf32>
    %57 = arith.divf %55, %56 : vector<1x32xf32>
    %58 = vector.extract_strided_slice %46 {offsets = [0, 32], sizes = [1, 32], strides = [1, 1]} : vector<1x96xf32> to vector<1x32xf32>
    %59 = vector.extract_strided_slice %49 {offsets = [0, 32], sizes = [1, 32], strides = [1, 1]} : vector<1x96xf32> to vector<1x32xf32>
    %60 = arith.addf %58, %59 : vector<1x32xf32>
    %61 = arith.negf %60 : vector<1x32xf32>
    %62 = math.exp %61 : vector<1x32xf32>
    %cst_33 = arith.constant 1.000000e+00 : f32
    %63 = vector.broadcast %cst_33 : f32 to vector<1x32xf32>
    %64 = arith.addf %63, %62 : vector<1x32xf32>
    %65 = arith.divf %63, %64 : vector<1x32xf32>
    %66 = vector.extract_strided_slice %46 {offsets = [0, 64], sizes = [1, 32], strides = [1, 1]} : vector<1x96xf32> to vector<1x32xf32>
    %67 = vector.extract_strided_slice %49 {offsets = [0, 64], sizes = [1, 32], strides = [1, 1]} : vector<1x96xf32> to vector<1x32xf32>
    %68 = arith.mulf %57, %67 : vector<1x32xf32>
    %69 = arith.addf %66, %68 : vector<1x32xf32>
    %70 = math.tanh %69 : vector<1x32xf32>
    %cst_34 = arith.constant 1.000000e+00 : f32
    %71 = vector.broadcast %cst_34 : f32 to vector<1x32xf32>
    %72 = arith.subf %71, %65 : vector<1x32xf32>
    %73 = arith.mulf %72, %70 : vector<1x32xf32>
    %74 = arith.mulf %65, %8 : vector<1x32xf32>
    %75 = arith.addf %73, %74 : vector<1x32xf32>
    %c0_35 = arith.constant 0 : index
    %c0_36 = arith.constant 0 : index
    %76 = vector.load %arg11[%c0_35, %c0_36] : memref<1x32xf32, #tpu.memory_space<vmem>>, vector<1x32xf32>
    tpu.vector_store %arg11[%c0_35, %c0_36], %75 {strides = array<i32>} : memref<1x32xf32, #tpu.memory_space<vmem>>, vector<1x32xf32>,
    %c0_37 = arith.constant 0 : index
    %c0_38 = arith.constant 0 : index
    %77 = vector.load %arg8[%c0_37, %c0_38] : memref<32x64xf32, #tpu.memory_space<vmem>>, vector<32x64xf32>
    %cst_39 = arith.constant dense<0.000000e+00> : vector<1x64xf32>
    %78 = tpu.matmul %75, %77, %cst_39 {dimension_numbers = #tpu.dot_dimension_numbers<[1], [0], [0], [1], [0, 0, 1, 1], [], []>} : vector<1x32xf32>, vector<32x64xf32>, vector<1x64xf32> -> vector<1x64xf32>
    %79 = arith.addf %78, %14 : vector<1x64xf32>
    %cst_40 = arith.constant dense<0xFF800000> : vector<1xf32>
    %80 = vector.multi_reduction <maximumf>, %79, %cst_40 [1] : vector<1x64xf32> to vector<1xf32>
    %81 = vector.shape_cast %80 : vector<1xf32> to vector<1x1xf32>
    %82 = vector.broadcast %81 : vector<1x1xf32> to vector<1x64xf32>
    %83 = arith.subf %79, %82 : vector<1x64xf32>
    %84 = math.exp %83 : vector<1x64xf32>
    %cst_41 = arith.constant dense<0.000000e+00> : vector<1xf32>
    %85 = vector.multi_reduction <add>, %84, %cst_41 [1] : vector<1x64xf32> to vector<1xf32>
    %86 = vector.shape_cast %85 : vector<1xf32> to vector<1x1xf32>
    %87 = math.log %86 : vector<1x1xf32>
    %88 = arith.addf %87, %81 : vector<1x1xf32>
    %89 = vector.broadcast %88 : vector<1x1xf32> to vector<1x64xf32>
    %90 = arith.subf %79, %89 : vector<1x64xf32>
    %c0_42 = arith.constant 0 : index
    %c0_43 = arith.constant 0 : index
    %91 = vector.load %arg10[%c0_42, %c0_43] : memref<1x64xf32, #tpu.memory_space<vmem>>, vector<1x64xf32>
    tpu.vector_store %arg10[%c0_42, %c0_43], %90 {strides = array<i32>} : memref<1x64xf32, #tpu.memory_space<vmem>>, vector<1x64xf32>,
    return
  }
  func.func @transform_0(%arg0: i32, %arg1: memref<1xi32, #tpu.memory_space<smem>>) -> (i32, i32) {
    %c0_i32 = arith.constant 0 : i32
    %c0_i32_0 = arith.constant 0 : i32
    %c0_i32_1 = arith.constant 0 : i32
    return %c0_i32, %c0_i32_0 : i32, i32
  }
  func.func @transform_1(%arg0: i32, %arg1: memref<1xi32, #tpu.memory_space<smem>>) -> (i32, i32) {
    %c0_i32 = arith.constant 0 : i32
    %c0_i32_0 = arith.constant 0 : i32
    %c0_i32_1 = arith.constant 0 : i32
    return %c0_i32, %c0_i32_0 : i32, i32
  }
  func.func @transform_2(%arg0: i32, %arg1: memref<1xi32, #tpu.memory_space<smem>>) -> (i32, i32) {
    %c0_i32 = arith.constant 0 : i32
    %c0_i32_0 = arith.constant 0 : i32
    %c0_i32_1 = arith.constant 0 : i32
    return %c0_i32, %c0_i32_0 : i32, i32
  }
  func.func @transform_3(%arg0: i32, %arg1: memref<1xi32, #tpu.memory_space<smem>>) -> (i32, i32) {
    %c0_i32 = arith.constant 0 : i32
    %c0_i32_0 = arith.constant 0 : i32
    %c0_i32_1 = arith.constant 0 : i32
    return %c0_i32, %c0_i32_0 : i32, i32
  }
  func.func @transform_4(%arg0: i32, %arg1: memref<1xi32, #tpu.memory_space<smem>>) -> (i32, i32) {
    %c0_i32 = arith.constant 0 : i32
    %c0_i32_0 = arith.constant 0 : i32
    %c0_i32_1 = arith.constant 0 : i32
    return %c0_i32, %c0_i32_0 : i32, i32
  }
  func.func @transform_5(%arg0: i32, %arg1: memref<1xi32, #tpu.memory_space<smem>>) -> (i32, i32) {
    %c0_i32 = arith.constant 0 : i32
    %c0_i32_0 = arith.constant 0 : i32
    %c0_i32_1 = arith.constant 0 : i32
    return %c0_i32, %c0_i32_0 : i32, i32
  }
  func.func @transform_6(%arg0: i32, %arg1: memref<1xi32, #tpu.memory_space<smem>>) -> (i32, i32) {
    %c0_i32 = arith.constant 0 : i32
    %c0_i32_0 = arith.constant 0 : i32
    %c0_i32_1 = arith.constant 0 : i32
    return %c0_i32, %c0_i32_0 : i32, i32
  }
  func.func @transform_7(%arg0: i32, %arg1: memref<1xi32, #tpu.memory_space<smem>>) -> (i32, i32) {
    %c0_i32 = arith.constant 0 : i32
    %c0_i32_0 = arith.constant 0 : i32
    %c0_i32_1 = arith.constant 0 : i32
    return %c0_i32, %c0_i32_0 : i32, i32
  }
  func.func @transform_8(%arg0: i32, %arg1: memref<1xi32, #tpu.memory_space<smem>>) -> (i32, i32) {
    %c0_i32 = arith.constant 0 : i32
    %c0_i32_0 = arith.constant 0 : i32
    %c0_i32_1 = arith.constant 0 : i32
    return %c0_i32, %c0_i32_0 : i32, i32
  }
  func.func @transform_9(%arg0: i32, %arg1: memref<1xi32, #tpu.memory_space<smem>>) -> (i32, i32) {
    %c0_i32 = arith.constant 0 : i32
    %c0_i32_0 = arith.constant 0 : i32
    %c0_i32_1 = arith.constant 0 : i32
    return %c0_i32, %c0_i32_0 : i32, i32
  }
  func.func @transform_10(%arg0: i32, %arg1: memref<1xi32, #tpu.memory_space<smem>>) -> (i32, i32) {
    %c0_i32 = arith.constant 0 : i32
    %c0_i32_0 = arith.constant 0 : i32
    %c0_i32_1 = arith.constant 0 : i32
    return %c0_i32, %c0_i32_0 : i32, i32
  }
}

</mosaic_0001>

<bundles_post_ra>
// kernel: attn_decoder_forward.1
= control target key start
LH: loop header
LB: loop body
LE: loop exit
PB: predicated region body
PF: predicated region fallthrough
CT: control target
= control target key end

     0   :  { %18 = vsyncpa [#allocation5], 0  ;;  %v1134_v1 = vmov 0.0   ;;  %vm1135_vm0 = vmmov 0   ;;  %v37_v5 = vlaneseq  ;;  %s1446_s0 = inlined_call_operand.<no memory space> [shape: s32[1], index: 0, kind: input, shape index: {}]   ;;  %s1447_s1 = inlined_call_operand.vmem [shape: f32[64,32], index: 1, kind: input, shape index: {}]   ;;  %s1448_s2 = inlined_call_operand.vmem [shape: f32[1,32], index: 2, kind: input, shape index: {}]   ;;  %s1449_s3 = inlined_call_operand.vmem [shape: f32[60,32], index: 3, kind: input, shape index: {}]   ;;  %s1450_s4 = inlined_call_operand.vmem [shape: f32[64,60], index: 4, kind: input, shape index: {}]   ;;  %s1451_s5 = inlined_call_operand.vmem [shape: f32[64,32], index: 5, kind: input, shape index: {}]   ;;  %s1452_s6 = inlined_call_operand.vmem [shape: f32[64,96], index: 6, kind: input, shape index: {}]   ;;  %s1453_s7 = inlined_call_operand.vmem [shape: f32[32,64], index: 7, kind: input, shape index: {}]   ;;  %s1454_s8 = inlined_call_operand.vmem [shape: f32[8,128], index: 8, kind: input, shape index: {}]   ;;  %s1455_s9 = inlined_call_operand.hbm [shape: f32[1,64], index: 9, kind: output, shape index: {0}]   ;;  %s1456_s10 = inlined_call_operand.hbm [shape: f32[1,32], index: 10, kind: output, shape index: {1}]   ;;  %s1457_s11 = inlined_call_operand.hbm [shape: f32[1,60], index: 11, kind: output, shape index: {2}]  }
   0x1   :  { %v50_v0 = vld [vmem:[%s1447_s1 + $0x38] sm:$0xff]  ;;  %933 = vmatprep.subr.mxu0 %v1134_v1  ;;  %v49_v2 = vld [vmem:[%s1447_s1 + $0x30] sm:$0xff]  ;;  %949 = vmatprep.mubr.msk.f32.mxu0 %vm1135_vm0, %v1134_v1  ;;  %v48_v4 = vld [vmem:[%s1447_s1 + $0x28] sm:$0xff] }
   0x2   :  { %934 = vmatpush3.msra.mxu0 %v50_v0  ;;  %952 = vmatprep.subr.mxu1 %v1134_v1  ;;  %v134_v3 = vld [vmem:[%s1450_s4 + $0x38] sm:$0xff]  ;;  %v133_v6 = vld [vmem:[%s1450_s4 + $0x30] sm:$0xff]  ;;  %v132_v7 = vld [vmem:[%s1450_s4 + $0x28] sm:$0xff] }
   0x3   :  { %935 = vmatprep.subr.mxu0 %v1134_v1  ;;  %953 = vmatpush3.msra.mxu1 %v134_v3  ;;  %v47_v8 = vld [vmem:[%s1447_s1 + $0x20] sm:$0xff] }
   0x4   :  { %936 = vmatpush3.msra.mxu0 %v49_v2  ;;  %954 = vmatprep.subr.mxu1 %v1134_v1 }
   0x5   :  { %937 = vmatprep.subr.mxu0 %v1134_v1  ;;  %955 = vmatpush3.msra.mxu1 %v133_v6 }
   0x6   :  { %19 = vsyncpa [#allocation7], 0  ;;  %938 = vmatpush3.msra.mxu0 %v48_v4  ;;  %956 = vmatprep.subr.mxu1 %v1134_v1  ;;  %v131_v9 = vld [vmem:[%s1450_s4 + $0x20] sm:$0xff]  ;;  %v46_v10 = vld [vmem:[%s1447_s1 + $0x18] sm:$0xff]  ;;  %v38_v11 = vand.u32 127, %v37_v5  ;;  %v39_v12 = vstv %s1446_s0  ;;  %vm135_vm1 = vcmask 261120  }
   0x7   :  { %939 = vmatprep.subr.mxu0 %v1134_v1  ;;  %957 = vmatpush3.msra.mxu1 %v132_v7  ;;  %v1246_v13 = vld [vmem:[%s1448_s2] sm:$0x1]  ;;  %v45_v14 = vld [vmem:[%s1447_s1 + $0x10] sm:$0xff]  ;;  %v130_v15 = vld [vmem:[%s1450_s4 + $0x18] sm:$0xff]  ;;  %vm51_vm3 = vcmask 523264   ;;  %vm283_vm4 = vcmask 483328  }
   0x8   :  { %940 = vmatpush3.msra.mxu0 %v47_v8  ;;  %958 = vmatprep.subr.mxu1 %v1134_v1  ;;  %v44_v16 = vld [vmem:[%s1447_s1 + $0x8] sm:$0xff]  ;;  %vm40_vm2 = vcmp.eq.s32.totalorder %v38_v11, %v39_v12  ;;  %v129_v17 = vld [vmem:[%s1450_s4 + $0x10] sm:$0xff]  ;;  %v43_v18 = vld [vmem:[%s1447_s1] sm:$0xff]  ;;  %vm308_vm5 = vcmask 1043456   ;;  %vm304_vm6 = vcmask 490496   ;;  %s1138_s18 = smov 96  }
   0x9   :  { %941 = vmatprep.subr.mxu0 %v1134_v1  ;;  %959 = vmatpush3.msra.mxu1 %v131_v9  ;;  %v868_v19 = vsel %vm40_vm2, 1.0, %v1134_v1  ;;  %v128_v20 = vld [vmem:[%s1450_s4 + $0x8] sm:$0xff]  ;;  %v127_v21 = vld [vmem:[%s1450_s4] sm:$0xff]  ;;  %v303_v37 = vld [vmem:[%s1449_s3 + $0x38] sm:$0xf]  ;;  %vm732_vm8 = vcmask 253952  }
   0xa   :  { %942 = vmatpush3.msra.mxu0 %v46_v10  ;;  %960 = vmatprep.mubr.msk.f32.mxu1 %vm1135_vm0, %v1134_v1  ;;  %v1297_v27 = vld [vmem:[%s1454_s8] sm:$0xff]  ;;  %v302_v38 = vld [vmem:[%s1449_s3 + $0x30] sm:$0xff]  ;;  %v301_v39 = vld [vmem:[%s1449_s3 + $0x28] sm:$0xff]  ;;  %vm812_vm9 = vcmask 516096  }
   0xb   :  { %943 = vmatprep.subr.mxu0 %v1134_v1  ;;  %961 = vmatmul.mubr.msk.f32.vlgmr.msra.gmra.mxu1 %vm135_vm1, %v1246_v13  ;;  %v300_v40 = vld [vmem:[%s1449_s3 + $0x20] sm:$0xff]  ;;  %v299_v41 = vld [vmem:[%s1449_s3 + $0x18] sm:$0xff]  ;;  %v298_v42 = vld [vmem:[%s1449_s3 + $0x10] sm:$0xff]  ;;  %v534_v6 = vrot.slane %v1297_v27, 1  ;;  %v623_v12 = vrot.slane %v1297_v27, 3 }
   0xc   :  { %944 = vmatpush3.msra.mxu0 %v45_v14  ;;  %963 = vmatprep.subr.mxu1 %v1134_v1  ;;  %v297_v43 = vld [vmem:[%s1449_s3 + $0x8] sm:$0xff]  ;;  %v296_v44 = vld [vmem:[%s1449_s3] sm:$0xff]  ;;  %v389_v45 = vld [vmem:[%s1451_s5 + $0x38] sm:$0xff]  ;;  %s1137_s3 = smov 32  }
   0xd   :  { %945 = vmatprep.subr.mxu0 %v1134_v1  ;;  %964 = vmatpush3.msra.mxu1 %v130_v15  ;;  %v388_v46 = vld [vmem:[%s1451_s5 + $0x30] sm:$0xff]  ;;  %v387_v47 = vld [vmem:[%s1451_s5 + $0x28] sm:$0xff]  ;;  %v386_v48 = vld [vmem:[%s1451_s5 + $0x20] sm:$0xff] }
   0xe   :  { %946 = vmatpush3.msra.mxu0 %v44_v16  ;;  %965 = vmatprep.subr.mxu1 %v1134_v1  ;;  %v385_v52 = vld [vmem:[%s1451_s5 + $0x18] sm:$0xff]  ;;  %v384_v54 = vld [vmem:[%s1451_s5 + $0x10] sm:$0xff]  ;;  %v383_v56 = vld [vmem:[%s1451_s5 + $0x8] sm:$0xff] }
   0xf   :  { %947 = vmatprep.subr.mxu0 %v1134_v1  ;;  %966 = vmatpush3.msra.mxu1 %v129_v17  ;;  %v382_v57 = vld [vmem:[%s1451_s5] sm:$0xff]  ;;  %v622_v58 = vld [vmem:[%s1452_s6 + $0x38] sm:$0xff]  ;;  %v621_v59 = vld [vmem:[%s1452_s6 + $0x30] sm:$0xff] }
  0x10   :  { %948 = vmatpush3.msra.mxu0 %v43_v18  ;;  %967 = vmatprep.subr.mxu1 %v1134_v1  ;;  %v620_v60 = vld [vmem:[%s1452_s6 + $0x28] sm:$0xff]  ;;  %v619_v61 = vld [vmem:[%s1452_s6 + $0x20] sm:$0xff]  ;;  %v543_v62 = vld [vmem:[%s1452_s6 + $0x18] sm:$0xff]  ;;  %v544_v18 = vrot.slane %v1297_v27, 2 }
  0x11   :  { %950 = vmatmul.mubr.msk.f32.vlgmr.msra.gmra.mxu0 %vm51_vm3, %v868_v19  ;;  %968 = vmatpush3.msra.mxu1 %v128_v20  ;;  %v542_v63 = vld [vmem:[%s1452_s6 + $0x10] sm:$0xff]  ;;  %v541_v0 = vld [vmem:[%s1452_s6 + $0x8] sm:$0xff]  ;;  %v540_v2 = vld [vmem:[%s1452_s6] sm:$0xff]  ;;  %s1136_s6 = smov 64  }
  0x12   :  { %969 = vmatprep.subr.mxu1 %v1134_v1  ;;  %971 = vmatprep.mubr.msk.f32.mxu1 %vm1135_vm0, %v1134_v1 }
  0x13   :  { %974 = vmatprep.subr.mxu0 %v1134_v1  ;;  %990 = vmatprep.mubr.msk.f32.mxu0 %vm1135_vm0, %v1134_v1 }
  0x14   :  { %970 = vmatpush3.msra.mxu1 %v127_v21  ;;  %975 = vmatpush3.msk.msra.mxu0 %vm308_vm5, %v303_v37 }
  0x15   :  { %993 = vmatprep.subr.mxu1 %v1134_v1  ;;  %976 = vmatprep.subr.mxu0 %v1134_v1 }
  0x16   :  { %977 = vmatpush3.msra.mxu0 %v302_v38 }
  0x17   :  { %978 = vmatprep.subr.mxu0 %v1134_v1 }
  0x18   :  { %979 = vmatpush3.msra.mxu0 %v301_v39 }
  0x19   :  { %980 = vmatprep.subr.mxu0 %v1134_v1 }
  0x1a   :  { %981 = vmatpush3.msra.mxu0 %v300_v40 }
  0x1b   :  { %982 = vmatprep.subr.mxu0 %v1134_v1 }
  0x1c   :  { %983 = vmatpush3.msra.mxu0 %v299_v41 }
  0x1d   :  { %984 = vmatprep.subr.mxu0 %v1134_v1 }
  0x1e   :  { %985 = vmatpush3.msra.mxu0 %v298_v42 }
  0x1f   :  { %986 = vmatprep.subr.mxu0 %v1134_v1 }
  0x20   :  { %987 = vmatpush3.msra.mxu0 %v297_v43 }
  0x21   :  { %988 = vmatprep.subr.mxu0 %v1134_v1 }
  0x22   :  { %989 = vmatpush3.msra.mxu0 %v296_v44 }
  0x23   :  { %1015 = vmatprep.subr.mxu0 %v1134_v1 }
  0xcb   :  { %v205_v22 = vpop.f32.mrf.mxu1 }
  0xcd   :  { %v962_v23 = vpop.f32.mrf.mxu1 }
  0xd1   :  { %v1288_v24 = vpop.f32.mrf.mxu0 }
  0xd2   :  { %972 = vmatmul.mubr.msk.f32.vlgmr.msra.gmra.mxu1 %vm135_vm1, %v1288_v24 }
  0xd3   :  { %v951_v25 = vpop.f32.mrf.mxu0  ;;  %1001 = vmatprep.mubr.msk.f32.mxu1 %vm1135_vm0, %v1134_v1  ;;  %994 = vmatpush3.msra.mxu1 %v389_v45  ;;  %v738_v45 = vrot.slane %v1297_v27, 4 }
  0xd4   :  { %995 = vmatprep.subr.mxu1 %v1134_v1 }
  0xd5   :  { %996 = vmatpush3.msra.mxu1 %v388_v46 }
  0xd6   :  { %997 = vmatprep.subr.mxu1 %v1134_v1 }
  0xd7   :  { %998 = vmatpush3.msra.mxu1 %v387_v47 }
  0xd8   :  { %999 = vmatprep.subr.mxu1 %v1134_v1 }
  0xd9   :  { %1000 = vmatpush3.msra.mxu1 %v386_v48 }
  0xda   :  { %1004 = vmatprep.subr.mxu1 %v1134_v1 }
 0x192   :  { %v278_v26 = vpop.f32.mrf.mxu1 }
 0x193   :  { %v279_v28 = vadd.f32 %v278_v26, %v205_v22  ;;  %v720_v26 = vshrl.u32 %v37_v5, 7  ;;  %v736_v5 = vld [vmem:[%s1453_s7 + $0x10] sm:$0xff] }
 0x194   :  { %v973_v29 = vpop.f32.mrf.mxu1 }
 0x195   :  { %v282_v30 = vadd.f32 %v279_v28, %v1297_v27  ;;  %v721_v29 = vsub.s32 0, %v720_v26 }
 0x197   :  { %v284_v31 = vsel %vm283_vm4, %v282_v30, -inf }
 0x198   :  { %285 = vmax.xlane.f32.xlu0 %v284_v31 }
 0x221   :  { %v286_v32 = vpop.xlane.xlu0 %285 }
 0x222   :  { %v287_v33 = vsub.f32 %v282_v30, %v286_v32  ;;  %v722_v32 = vrot.slane %v1246_v13, %v721_v29 }
 0x224   :  { %v288_v34 = vmul.f32 1.442695, %v287_v33 }
 0x226   :  { %1056 = vpow2.f32 %v288_v34 }
 0x233   :  { %v1057_v35 = vpop.eup %1056 }
 0x234   :  { %v290_v36 = vsel %vm283_vm4, %v1057_v35, 0.0 }
 0x235   :  { %291 = vadd.xlane.f32.xlu0 %v290_v36  ;;  %v734_v36 = vld [vmem:[%s1453_s7] sm:$0xff] }
 0x2be   :  { %v292_v49 = vpop.xlane.xlu0 %291 }
 0x2bf   :  { %1058 = vrcp.f32 %v292_v49 }
 0x2cc   :  { %v1059_v50 = vpop.eup %1058 }
 0x2cd   :  { %v294_v51 = vmul.f32 %v1059_v50, %v1057_v35  ;;  %v737_v35 = vld [vmem:[%s1453_s7 + $0x18] sm:$0xff] }
 0x2cf   :  { %991 = vmatmul.mubr.msk.f32.vlgmr.msra.gmra.mxu0 %vm304_vm6, %v294_v51  ;;  %295 = vst.msk [vmem:[#allocation8] sm:$0x1] %vm283_vm4, %v294_v51 }
 0x2d0   :  { %1023 = vmatprep.mubr.msk.f32.mxu0 %vm1135_vm0, %v1134_v1  ;;  %1016 = vmatpush3.msra.mxu0 %v543_v62 }
 0x2d1   :  { %1017 = vmatprep.subr.mxu0 %v1134_v1 }
 0x2d2   :  { %1018 = vmatpush3.msra.mxu0 %v542_v63 }
 0x2d3   :  { %1019 = vmatprep.subr.mxu0 %v1134_v1 }
 0x2d4   :  { %1020 = vmatpush3.msra.mxu0 %v541_v0 }
 0x2d5   :  { %1021 = vmatprep.subr.mxu0 %v1134_v1 }
 0x2d6   :  { %1022 = vmatpush3.msra.mxu0 %v540_v2 }
 0x2d7   :  { %1037 = vmatprep.subr.mxu0 %v1134_v1 }
 0x38f   :  { %v378_v53 = vpop.f32.mrf.mxu0 }
 0x390   :  { %1002 = vmatmul.mubr.msk.f32.vlgmr.msra.gmra.mxu1 %vm135_vm1, %v378_v53 }
 0x391   :  { %1005 = vmatpush3.msra.mxu1 %v385_v52  ;;  %v992_v55 = vpop.f32.mrf.mxu0  ;;  %1012 = vmatprep.mubr.msk.f32.mxu1 %vm1135_vm0, %v1134_v1 }
 0x392   :  { %1006 = vmatprep.subr.mxu1 %v1134_v1 }
 0x393   :  { %1007 = vmatpush3.msra.mxu1 %v384_v54 }
 0x394   :  { %1008 = vmatprep.subr.mxu1 %v1134_v1 }
 0x395   :  { %1009 = vmatpush3.msra.mxu1 %v383_v56 }
 0x396   :  { %1010 = vmatprep.subr.mxu1 %v1134_v1 }
 0x397   :  { %1011 = vmatpush3.msra.mxu1 %v382_v57 }
 0x398   :  { %1013 = vmatmul.mubr.msk.f32.vlgmr.msra.gmra.mxu1 %vm135_vm1, %v1288_v24  ;;  %1026 = vmatprep.subr.mxu1 %v1134_v1 }
 0x399   :  { %1027 = vmatpush3.msra.mxu1 %v622_v58  ;;  %1034 = vmatprep.mubr.msk.f32.mxu1 %vm1135_vm0, %v1134_v1 }
 0x39a   :  { %1028 = vmatprep.subr.mxu1 %v1134_v1 }
 0x39b   :  { %1029 = vmatpush3.msra.mxu1 %v621_v59 }
 0x39c   :  { %1030 = vmatprep.subr.mxu1 %v1134_v1 }
 0x39d   :  { %1031 = vmatpush3.msra.mxu1 %v620_v60 }
 0x39e   :  { %1032 = vmatprep.subr.mxu1 %v1134_v1 }
 0x39f   :  { %1033 = vmatpush3.msra.mxu1 %v619_v61 }
 0x3a0   :  { %1035 = vmatmul.mubr.msk.f32.vlgmr.msra.gmra.mxu1 %vm135_vm1, %v1246_v13  ;;  %v735_v13 = vld [vmem:[%s1453_s7 + $0x8] sm:$0xff]  ;;  %s1139_s7 = smov [#allocation6]  }
 0x3a1   :  { %s843_s19 = sshll.u32 %s1139_s7, 4  ;;  %s844_s19 = int_to_ptr.vmem [resolvable:$true] %s843_s19 }
 0x3a2   :  { %s1070_s20 = scalar_lea.vmem %s844_s19, 16  ;;  %s1074_s21 = scalar_lea.vmem %s844_s19, 32 }
 0x3a3   :  { %p1071_p0 = scmp.ne.s32.totalorder %s844_s19, %s1070_s20  ;;  %p1075_p1 = scmp.lt.s32.totalorder %s844_s19, %s844_s19 }
 0x3a4   :  { %p1076_p2 = scmp.lt.s32.totalorder %s1074_s21, %s1070_s20 }
 0x3a6   :  { %p1077_p3 = por %p1076_p2, %p1075_p1 }
 0x3a8   :  { %p1078_p4 = pnand %p1077_p3, %p1071_p0 }
 0x450   :  { %v459_v3 = vpop.f32.mrf.mxu1 }
 0x452   :  { %v1003_v4 = vpop.f32.mrf.mxu1 }
 0x458   :  { %v529_v7 = vpop.f32.mrf.mxu1 }
 0x459   :  { %v530_v8 = vadd.f32 %v529_v7, %v459_v3 }
 0x45a   :  { %v1014_v9 = vpop.f32.mrf.mxu1 }
 0x45b   :  { %v536_v10 = vadd.f32 %v534_v6, %v530_v8 }
 0x45d   :  { %vm537_vm7 = vcmp.gt.f32.partialorder %v536_v10, 0.0  ;;  %v538_v11 = vmul.f32 0.01, %v536_v10 }
 0x45f   :  { %v539_v14 = vsel %vm537_vm7, %v536_v10, %v538_v11 }
 0x460   :  { %1024 = vmatmul.mubr.msk.f32.vlgmr.msra.gmra.mxu0 %vm135_vm1, %v539_v14  ;;  %v691_v15 = vpop.f32.mrf.mxu1 }
 0x461   :  { %v692_v16 = vadd.f32 %v691_v15, %v623_v12  ;;  %1045 = vmatprep.mubr.msk.f32.mxu0 %vm1135_vm0, %v1134_v1  ;;  %1038 = vmatpush3.msra.mxu0 %v737_v35 }
 0x462   :  { %v1036_v17 = vpop.f32.mrf.mxu1  ;;  %1039 = vmatprep.subr.mxu0 %v1134_v1 }
 0x463   :  { %703 = vrot.lane.b32.xlu1 %v692_v16, %s1136_s6  ;;  %1040 = vmatpush3.msra.mxu0 %v736_v5 }
 0x464   :  { %1041 = vmatprep.subr.mxu0 %v1134_v1 }
 0x465   :  { %1042 = vmatpush3.msra.mxu0 %v735_v13 }
 0x466   :  { %1043 = vmatprep.subr.mxu0 %v1134_v1 }
 0x467   :  { %1044 = vmatpush3.msra.mxu0 %v734_v36 }
 0x4d5   :  { %v704_v28 = vpop.permute.xlu1 %703 }
 0x520   :  { %v615_v19 = vpop.f32.mrf.mxu0 }
 0x521   :  { %v616_v20 = vadd.f32 %v615_v19, %v544_v18 }
 0x522   :  { %v1025_v21 = vpop.f32.mrf.mxu0 }
 0x523   :  { %v695_v22 = vadd.f32 %v692_v16, %v616_v20 }
 0x525   :  { %v878_v23 = vmul.f32 -1.442695, %v695_v22 }
 0x527   :  { %1060 = vpow2.f32 %v878_v23 }
 0x534   :  { %v1061_v24 = vpop.eup %1060 }
 0x535   :  { %v699_v25 = vadd.f32 1.0, %v1061_v24 }
 0x537   :  { %1062 = vrcp.f32 %v699_v25 }
 0x544   :  { %v1063_v30 = vpop.eup %1062 }
 0x545   :  { %v706_v31 = vmul.f32 %v1063_v30, %v704_v28  ;;  %v713_v39 = vsub.f32 1.0, %v1063_v30 }
 0x547   :  { %708 = vrot.lane.b32.xlu1 %v706_v31, %s1136_s6 }
 0x54b   :  { %723 = vrot.lane.b32.xlu1 %v722_v32, %s1137_s3 }
 0x5b9   :  { %v709_v33 = vpop.permute.xlu1 %708 }
 0x5ba   :  { %v711_v34 = vadd.f32 %v709_v33, %v616_v20 }
 0x5bc   :  { %1064 = vtanh.f32 %v711_v34 }
 0x5bd   :  { %v724_v38 = vpop.permute.xlu1 %723 }
 0x5be   :  { %v726_v41 = vmul.f32 %v1063_v30, %v724_v38 }
 0x5c9   :  { %v1065_v37 = vpop.eup %1064 }
 0x5ca   :  { %715 = vrot.lane.b32.xlu0 %v1065_v37, %s1138_s18 }
 0x63c   :  { %v716_v40 = vpop.permute.xlu0 %715 }
 0x63d   :  { %v718_v42 = vmul.f32 %v716_v40, %v713_v39 }
 0x63f   :  { %v727_v43 = vadd.f32 %v726_v41, %v718_v42 }
 0x641   :  { %729 = vrot.lane.b32.xlu1 %v727_v43, %s1138_s18 }
 0x6b3   :  { %v730_v44 = vpop.permute.xlu1 %729 }
 0x6b4   :  { %1046 = vmatmul.mubr.msk.f32.vlgmr.msra.gmra.mxu0 %vm135_vm1, %v730_v44  ;;  %733 = vst.msk [vmem:[#allocation6] sm:$0x1] %vm732_vm8, %v730_v44 }
 0x774   :  { %v808_v46 = vpop.f32.mrf.mxu0 }
 0x775   :  { %v809_v1 = vadd.f32 %v808_v46, %v738_v45 }
 0x776   :  { %v1047_v47 = vpop.f32.mrf.mxu0 }
 0x777   :  { %v813_v48 = vsel %vm812_vm9, %v809_v1, -inf }
 0x778   :  { %814 = vmax.xlane.f32.xlu1 %v813_v48 }
 0x801   :  { %v815_v49 = vpop.xlane.xlu1 %814 }
 0x802   :  { %v816_v50 = vsub.f32 %v809_v1, %v815_v49 }
 0x804   :  { %v817_v51 = vmul.f32 1.442695, %v816_v50 }
 0x806   :  { %1066 = vpow2.f32 %v817_v51 }
 0x813   :  { %v1067_v52 = vpop.eup %1066 }
 0x814   :  { %v819_v53 = vsel %vm812_vm9, %v1067_v52, 0.0 }
 0x815   :  { %820 = vadd.xlane.f32.xlu0 %v819_v53 }
 0x816   :  { %1081 = shalt.err (!%p1078_p4)
}
 0x817   :  { %846 = dma.vmem_to_hbm [thread:$0]  %s844_s19, 16, %s1456_s10, [#allocation7]  }
 0x818   :  { %s1140_s22 = smov [#allocation8]  }
 0x819   :  { %s853_s2 = sshll.u32 %s1140_s22, 4  ;;  %s854_s2 = int_to_ptr.vmem [resolvable:$true] %s853_s2 }
 0x81a   :  { %s1090_s23 = scalar_lea.vmem %s854_s2, 16  ;;  %s1094_s24 = scalar_lea.vmem %s854_s2, 32 }
 0x81b   :  { %p1091_p5 = scmp.ne.s32.totalorder %s854_s2, %s1090_s23  ;;  %p1095_p6 = scmp.lt.s32.totalorder %s854_s2, %s854_s2 }
 0x81c   :  { %p1096_p7 = scmp.lt.s32.totalorder %s1094_s24, %s1090_s23 }
 0x81e   :  { %p1097_p8 = por %p1096_p7, %p1095_p6 }
 0x820   :  { %p1098_p9 = pnand %p1097_p8, %p1091_p5 }
 0x822   :  { %1101 = shalt.err (!%p1098_p9)
}
 0x823   :  { %856 = dma.vmem_to_hbm [thread:$0]  %s854_s2, 16, %s1457_s11, [#allocation7]  }
 0x824   :  { %s1141_s10 = smov [#allocation4]  }
 0x825   :  { %s833_s27 = sshll.u32 %s1141_s10, 4  ;;  %s834_s27 = int_to_ptr.vmem [resolvable:$true] %s833_s27 }
 0x826   :  { %s1110_s28 = scalar_lea.vmem %s834_s27, 16  ;;  %s1114_s29 = scalar_lea.vmem %s834_s27, 32 }
 0x827   :  { %p1111_p10 = scmp.ne.s32.totalorder %s834_s27, %s1110_s28  ;;  %p1115_p11 = scmp.lt.s32.totalorder %s834_s27, %s834_s27 }
 0x828   :  { %p1116_p12 = scmp.lt.s32.totalorder %s1114_s29, %s1110_s28 }
 0x82a   :  { %p1117_p13 = por %p1116_p12, %p1115_p11 }
 0x82c   :  { %p1118_p0 = pnand %p1117_p13, %p1111_p10 }
 0x89e   :  { %v821_v27 = vpop.xlane.xlu0 %820 }
 0x89f   :  { %1068 = vlog2.f32 %v821_v27 }
 0x8ac   :  { %v1069_v54 = vpop.eup %1068 }
 0x8ad   :  { %v823_v55 = vmul.f32 0.6931472, %v1069_v54 }
 0x8af   :  { %v824_v56 = vadd.f32 %v823_v55, %v815_v49 }
 0x8b1   :  { %v825_v57 = vsub.f32 %v809_v1, %v824_v56 }
 0x8b3   :  { %826 = vst.msk [vmem:[#allocation4] sm:$0x1] %vm812_vm9, %v825_v57 }
 0x8b4   :  { %1121 = shalt.err (!%p1118_p0)
}
 0x8b5   :  { %836 = dma.vmem_to_hbm [thread:$0]  %s834_s27, 16, %s1455_s9, [#allocation5]  }
 0x8b6   :  { %1130 = dma.done.wait [#allocation5], 16  }
 0x8b7   :  { %1131 = vsyncadd [#allocation5], 4294967280 }
 0x8b8   :  { %1132 = dma.done.wait [#allocation7], 32  }
 0x8b9   :  { %1133 = vsyncadd [#allocation7], 4294967264 }
 0x8ba   :  { %866 = vsyncpa [#allocation5], 1 }
 0x8bb   :  { %867 = vsyncpa [#allocation7], 1 }

</bundles_post_ra>
